<compile_context>
chip_gen: v5e
topology: v5e:2x2
jax: 0.10.0
libtpu: 0.0.40
codegen_flags: <defaults>
</compile_context>

<pallas_src>
import numpy as np
import jax
import jax.numpy as jnp
from jax.experimental import pallas as pl
from jax.experimental.pallas import tpu as pltpu

K = 3  # 3x3 kernels


def _ror_block_kernel(x_ref, w1_ref, w2_ref, p_ref, o_ref):
    # x_ref : (1, H+4, W*Cin)   bf16 input, 2 zero rows of padding top & bottom
    # w1_ref: (K, W*Cin, W*Cout) bf16 banded conv1 weights (one slab per ky tap)
    # w2_ref: (K, W*Cout, W*Cout) bf16 banded conv2 weights
    # p_ref : (4, W*Cout)        f32 rows = [scale1, bias1, scale2, bias2]
    # o_ref : (1, H, W*Cout)     f32 output
    H = o_ref.shape[1]
    WCo = o_ref.shape[2]

    x = x_ref[0]  # (H+4, W*Cin)

    # ---- conv1 (3x3 SAME) + BN1 + ReLU, evaluated on H+2 rows (rows -1..H) ----
    acc1 = jnp.zeros((H + 2, WCo), jnp.float32)
    for ky in range(K):
        acc1 = acc1 + jnp.dot(x[ky:ky + H + 2, :], w1_ref[ky],
                              preferred_element_type=jnp.float32)
    h1 = jnp.maximum(acc1 * p_ref[0:1, :] + p_ref[1:2, :], 0.0)

    # Zero the two halo rows: they become conv2's SAME zero padding along H.
    row = jax.lax.broadcasted_iota(jnp.int32, (H + 2, WCo), 0)
    h1 = jnp.where((row == 0) | (row == H + 1), 0.0, h1).astype(jnp.bfloat16)

    # (dropout: identity in eval mode / dropout_rate == 0)

    # ---- conv2 (3x3 SAME) + BN2 (no activation) ----
    acc2 = jnp.zeros((H, WCo), jnp.float32)
    for ky in range(K):
        acc2 = acc2 + jnp.dot(h1[ky:ky + H, :], w2_ref[ky],
                              preferred_element_type=jnp.float32)
    o_ref[0] = (acc2 * p_ref[2:3, :] + p_ref[3:4, :]).astype(o_ref.dtype)


def _banded_weights(w_hwio, W):
    """Fold the kx taps + SAME padding along W of a 3x3 conv into banded matmul
    weights.  w_hwio: (3, 3, Cin, Cout) -> (3, W*Cin, W*Cout), one slab per ky."""
    w = np.asarray(w_hwio, np.float32)
    _, _, Ci, Co = w.shape
    out = np.zeros((K, W * Ci, W * Co), np.float32)
    for ky in range(K):
        for j in range(W):
            for kx in range(K):
                jj = j + kx - 1
                if 0 <= jj < W:
                    out[ky, jj * Ci:(jj + 1) * Ci, j * Co:(j + 1) * Co] = w[ky, kx]
    return jnp.asarray(out)


def ror_block_pallas(x_nchw, w1, s1, b1, w2, s2, b2):
    """x_nchw: (B, Cin, H, W).  Weights are HWIO.  s*/b*: (1, Cout) folded BN.
    Returns (B, Cout, H, W)."""
    B, Cin, H, W = x_nchw.shape
    Cout = w1.shape[-1]
    WCi, WCo = W * Cin, W * Cout

    # NCHW -> NHWC -> lane-dense (B, H, W*Cin); pad H by 2 rows each side (halo).
    x = jnp.transpose(x_nchw, (0, 2, 3, 1)).reshape(B, H, WCi)
    x = jnp.pad(x, ((0, 0), (2, 2), (0, 0))).astype(jnp.bfloat16)

    w1b = _banded_weights(w1, W).astype(jnp.bfloat16)   # (3, W*Cin,  W*Cout)
    w2b = _banded_weights(w2, W).astype(jnp.bfloat16)   # (3, W*Cout, W*Cout)

    params = jnp.concatenate([
        jnp.tile(s1.reshape(1, Cout), (1, W)),
        jnp.tile(b1.reshape(1, Cout), (1, W)),
        jnp.tile(s2.reshape(1, Cout), (1, W)),
        jnp.tile(b2.reshape(1, Cout), (1, W)),
    ], axis=0).astype(jnp.float32)                       # (4, W*Cout)

    out = pl.pallas_call(
        _ror_block_kernel,
        out_shape=jax.ShapeDtypeStruct((B, H, WCo), jnp.float32),
        grid_spec=pltpu.PrefetchScalarGridSpec(
            num_scalar_prefetch=0,
            grid=(B,),
            in_specs=[
                pl.BlockSpec((1, H + 4, WCi), lambda b: (b, 0, 0)),
                pl.BlockSpec((K, WCi, WCo), lambda b: (0, 0, 0)),
                pl.BlockSpec((K, WCo, WCo), lambda b: (0, 0, 0)),
                pl.BlockSpec((4, WCo), lambda b: (0, 0)),
            ],
            out_specs=pl.BlockSpec((1, H, WCo), lambda b: (b, 0, 0)),
        ),
        compiler_params=pltpu.CompilerParams(
            dimension_semantics=("parallel",)),
    )(x, w1b, w2b, params)

    # (B, H, W*Cout) -> NCHW
    return jnp.transpose(out.reshape(B, H, W, Cout), (0, 3, 1, 2))


def ror_block_reference(x_nchw, w1, s1, b1, w2, s2, b2):
    """Pure-JAX f32 reference (lax conv) for verification."""
    x = jnp.transpose(x_nchw, (0, 2, 3, 1)).astype(jnp.float32)
    dn = ("NHWC", "HWIO", "NHWC")
    y = jax.lax.conv_general_dilated(x, w1, (1, 1), "SAME", dimension_numbers=dn,
                                     precision=jax.lax.Precision.HIGHEST)
    y = jnp.maximum(y * s1 + b1, 0.0)
    y = jax.lax.conv_general_dilated(y, w2, (1, 1), "SAME", dimension_numbers=dn,
                                     precision=jax.lax.Precision.HIGHEST)
    y = y * s2 + b2
    return jnp.transpose(y, (0, 3, 1, 2))


def fold_bn(gamma, beta, mean, var, eps=1e-5):
    scale = gamma / jnp.sqrt(var + eps)
    bias = beta - mean * scale
    return scale.reshape(1, -1), bias.reshape(1, -1)


if __name__ == "__main__":
    B, Cin, Cout, H, W = 2, 4, 8, 16, 16
    key = jax.random.PRNGKey(0)
    ks = jax.random.split(key, 8)

    # Input (NCHW, matching the PyTorch module's interface).
    x = jax.random.normal(ks[0], (B, Cin, H, W), dtype=jnp.float32)

    # conv1: 3x3, in=Cin, out=Cout, bias=False  (stored HWIO).
    w1 = jax.random.normal(ks[1], (K, K, Cin, Cout), dtype=jnp.float32) * 0.1
    # BN1 (eval mode) parameters, folded to scale/bias.
    g1 = 1.0 + 0.1 * jax.random.normal(ks[2], (Cout,), dtype=jnp.float32)
    be1 = 0.1 * jax.random.normal(ks[3], (Cout,), dtype=jnp.float32)
    m1 = 0.1 * jax.random.normal(ks[4], (Cout,), dtype=jnp.float32)
    v1 = jnp.abs(1.0 + 0.1 * jax.random.normal(ks[5], (Cout,), dtype=jnp.float32))
    s1, b1 = fold_bn(g1, be1, m1, v1)

    # conv2: 3x3, in=Cout, out=Cout, bias=False, activation=None.
    w2 = jax.random.normal(ks[6], (K, K, Cout, Cout), dtype=jnp.float32) * 0.1
    # BN2: PyTorch default init (gamma=1, beta=0, running_mean=0, running_var=1).
    s2, b2 = fold_bn(jnp.ones((Cout,), jnp.float32), jnp.zeros((Cout,), jnp.float32),
                     jnp.zeros((Cout,), jnp.float32), jnp.ones((Cout,), jnp.float32))

    # dropout_rate = 0.0 -> use_dropout is False (and identity at inference anyway).

    out = ror_block_pallas(x, w1, s1, b1, w2, s2, b2)
    out = jax.block_until_ready(out)

    ref = ror_block_reference(x, w1, s1, b1, w2, s2, b2)
    # bf16 MXU inputs with f32 accumulation -> looser tolerance than pure f32.
    np.testing.assert_allclose(np.asarray(out), np.asarray(ref), atol=2e-2, rtol=2e-2)

    print("KERNEL_OK")
</pallas_src>

<mosaic_0001>
module attributes {stable_mosaic.version = 11 : i64} {
  func.func @_ror_block_kernel(%arg0: i32, %arg1: memref<1x20x64xbf16, #tpu.memory_space<vmem>>, %arg2: memref<3x64x128xbf16, #tpu.memory_space<vmem>>, %arg3: memref<3x128x128xbf16, #tpu.memory_space<vmem>>, %arg4: memref<4x128xf32, #tpu.memory_space<vmem>>, %arg5: memref<1x16x128xf32, #tpu.memory_space<vmem>>) attributes {dimension_semantics = [#tpu.dimension_semantics<parallel>], iteration_bounds = array<i64: 2>, scalar_prefetch = 0 : i64, scratch_operands = 0 : i64, tpu.core_type = #tpu.core_type<tc>, window_params = [{transform_indices = @transform_0, window_bounds = array<i64: 1, 20, 64>}, {pipeline_mode = #tpu.pipeline_mode<synchronous>, transform_indices = @transform_1, window_bounds = array<i64: 3, 64, 128>}, {pipeline_mode = #tpu.pipeline_mode<synchronous>, transform_indices = @transform_2, window_bounds = array<i64: 3, 128, 128>}, {pipeline_mode = #tpu.pipeline_mode<synchronous>, transform_indices = @transform_3, window_bounds = array<i64: 4, 128>}, {transform_indices = @transform_4, window_bounds = array<i64: 1, 16, 128>}]} {
    %c0 = arith.constant 0 : index
    %c0_0 = arith.constant 0 : index
    %c0_1 = arith.constant 0 : index
    %0 = vector.load %arg1[%c0, %c0_0, %c0_1] : memref<1x20x64xbf16, #tpu.memory_space<vmem>>, vector<1x20x64xbf16>
    %1 = vector.shape_cast %0 : vector<1x20x64xbf16> to vector<20x64xbf16>
    %cst = arith.constant 0.000000e+00 : f32
    %2 = vector.broadcast %cst : f32 to vector<18x128xf32>
    %3 = vector.extract_strided_slice %1 {offsets = [0, 0], sizes = [18, 64], strides = [1, 1]} : vector<20x64xbf16> to vector<18x64xbf16>
    %c0_2 = arith.constant 0 : index
    %c0_3 = arith.constant 0 : index
    %c0_4 = arith.constant 0 : index
    %4 = vector.load %arg2[%c0_2, %c0_3, %c0_4] : memref<3x64x128xbf16, #tpu.memory_space<vmem>>, vector<1x64x128xbf16>
    %5 = vector.shape_cast %4 : vector<1x64x128xbf16> to vector<64x128xbf16>
    %cst_5 = arith.constant dense<0.000000e+00> : vector<18x128xf32>
    %6 = tpu.matmul %3, %5, %cst_5 {dimension_numbers = #tpu.dot_dimension_numbers<[1], [0], [0], [1], [0, 0, 1, 1], [], []>} : vector<18x64xbf16>, vector<64x128xbf16>, vector<18x128xf32> -> vector<18x128xf32>
    %7 = arith.addf %2, %6 : vector<18x128xf32>
    %8 = vector.extract_strided_slice %1 {offsets = [1, 0], sizes = [18, 64], strides = [1, 1]} : vector<20x64xbf16> to vector<18x64xbf16>
    %c1 = arith.constant 1 : index
    %c0_6 = arith.constant 0 : index
    %c0_7 = arith.constant 0 : index
    %9 = vector.load %arg2[%c1, %c0_6, %c0_7] : memref<3x64x128xbf16, #tpu.memory_space<vmem>>, vector<1x64x128xbf16>
    %10 = vector.shape_cast %9 : vector<1x64x128xbf16> to vector<64x128xbf16>
    %cst_8 = arith.constant dense<0.000000e+00> : vector<18x128xf32>
    %11 = tpu.matmul %8, %10, %cst_8 {dimension_numbers = #tpu.dot_dimension_numbers<[1], [0], [0], [1], [0, 0, 1, 1], [], []>} : vector<18x64xbf16>, vector<64x128xbf16>, vector<18x128xf32> -> vector<18x128xf32>
    %12 = arith.addf %7, %11 : vector<18x128xf32>
    %13 = vector.extract_strided_slice %1 {offsets = [2, 0], sizes = [18, 64], strides = [1, 1]} : vector<20x64xbf16> to vector<18x64xbf16>
    %c2 = arith.constant 2 : index
    %c0_9 = arith.constant 0 : index
    %c0_10 = arith.constant 0 : index
    %14 = vector.load %arg2[%c2, %c0_9, %c0_10] : memref<3x64x128xbf16, #tpu.memory_space<vmem>>, vector<1x64x128xbf16>
    %15 = vector.shape_cast %14 : vector<1x64x128xbf16> to vector<64x128xbf16>
    %cst_11 = arith.constant dense<0.000000e+00> : vector<18x128xf32>
    %16 = tpu.matmul %13, %15, %cst_11 {dimension_numbers = #tpu.dot_dimension_numbers<[1], [0], [0], [1], [0, 0, 1, 1], [], []>} : vector<18x64xbf16>, vector<64x128xbf16>, vector<18x128xf32> -> vector<18x128xf32>
    %17 = arith.addf %12, %16 : vector<18x128xf32>
    %c0_12 = arith.constant 0 : index
    %c0_13 = arith.constant 0 : index
    %18 = vector.load %arg4[%c0_12, %c0_13] : memref<4x128xf32, #tpu.memory_space<vmem>>, vector<1x128xf32>
    %19 = vector.broadcast %18 : vector<1x128xf32> to vector<18x128xf32>
    %20 = arith.mulf %17, %19 : vector<18x128xf32>
    %c1_14 = arith.constant 1 : index
    %c0_15 = arith.constant 0 : index
    %21 = vector.load %arg4[%c1_14, %c0_15] : memref<4x128xf32, #tpu.memory_space<vmem>>, vector<1x128xf32>
    %22 = vector.broadcast %21 : vector<1x128xf32> to vector<18x128xf32>
    %23 = arith.addf %20, %22 : vector<18x128xf32>
    %cst_16 = arith.constant 0.000000e+00 : f32
    %24 = vector.broadcast %cst_16 : f32 to vector<18x128xf32>
    %25 = arith.maximumf %23, %24 : vector<18x128xf32>
    %26 = tpu.iota {dimensions = array<i32: 0>} : vector<18x128xi32>
    %c0_i32 = arith.constant 0 : i32
    %27 = vector.broadcast %c0_i32 : i32 to vector<18x128xi32>
    %28 = arith.cmpi eq, %26, %27 : vector<18x128xi32>
    %c17_i32 = arith.constant 17 : i32
    %29 = vector.broadcast %c17_i32 : i32 to vector<18x128xi32>
    %30 = arith.cmpi eq, %26, %29 : vector<18x128xi32>
    %31 = arith.ori %28, %30 : vector<18x128xi1>
    %cst_17 = arith.constant 0.000000e+00 : f32
    %32 = vector.broadcast %cst_17 : f32 to vector<18x128xf32>
    %33 = arith.select %31, %32, %25 : vector<18x128xi1>, vector<18x128xf32>
    %34 = arith.truncf %33 : vector<18x128xf32> to vector<18x128xbf16>
    %cst_18 = arith.constant 0.000000e+00 : f32
    %35 = vector.broadcast %cst_18 : f32 to vector<16x128xf32>
    %36 = vector.extract_strided_slice %34 {offsets = [0, 0], sizes = [16, 128], strides = [1, 1]} : vector<18x128xbf16> to vector<16x128xbf16>
    %c0_19 = arith.constant 0 : index
    %c0_20 = arith.constant 0 : index
    %c0_21 = arith.constant 0 : index
    %37 = vector.load %arg3[%c0_19, %c0_20, %c0_21] : memref<3x128x128xbf16, #tpu.memory_space<vmem>>, vector<1x128x128xbf16>
    %38 = vector.shape_cast %37 : vector<1x128x128xbf16> to vector<128x128xbf16>
    %cst_22 = arith.constant dense<0.000000e+00> : vector<16x128xf32>
    %39 = tpu.matmul %36, %38, %cst_22 {dimension_numbers = #tpu.dot_dimension_numbers<[1], [0], [0], [1], [0, 0, 1, 1], [], []>} : vector<16x128xbf16>, vector<128x128xbf16>, vector<16x128xf32> -> vector<16x128xf32>
    %40 = arith.addf %35, %39 : vector<16x128xf32>
    %41 = vector.extract_strided_slice %34 {offsets = [1, 0], sizes = [16, 128], strides = [1, 1]} : vector<18x128xbf16> to vector<16x128xbf16>
    %c1_23 = arith.constant 1 : index
    %c0_24 = arith.constant 0 : index
    %c0_25 = arith.constant 0 : index
    %42 = vector.load %arg3[%c1_23, %c0_24, %c0_25] : memref<3x128x128xbf16, #tpu.memory_space<vmem>>, vector<1x128x128xbf16>
    %43 = vector.shape_cast %42 : vector<1x128x128xbf16> to vector<128x128xbf16>
    %cst_26 = arith.constant dense<0.000000e+00> : vector<16x128xf32>
    %44 = tpu.matmul %41, %43, %cst_26 {dimension_numbers = #tpu.dot_dimension_numbers<[1], [0], [0], [1], [0, 0, 1, 1], [], []>} : vector<16x128xbf16>, vector<128x128xbf16>, vector<16x128xf32> -> vector<16x128xf32>
    %45 = arith.addf %40, %44 : vector<16x128xf32>
    %46 = vector.extract_strided_slice %34 {offsets = [2, 0], sizes = [16, 128], strides = [1, 1]} : vector<18x128xbf16> to vector<16x128xbf16>
    %c2_27 = arith.constant 2 : index
    %c0_28 = arith.constant 0 : index
    %c0_29 = arith.constant 0 : index
    %47 = vector.load %arg3[%c2_27, %c0_28, %c0_29] : memref<3x128x128xbf16, #tpu.memory_space<vmem>>, vector<1x128x128xbf16>
    %48 = vector.shape_cast %47 : vector<1x128x128xbf16> to vector<128x128xbf16>
    %cst_30 = arith.constant dense<0.000000e+00> : vector<16x128xf32>
    %49 = tpu.matmul %46, %48, %cst_30 {dimension_numbers = #tpu.dot_dimension_numbers<[1], [0], [0], [1], [0, 0, 1, 1], [], []>} : vector<16x128xbf16>, vector<128x128xbf16>, vector<16x128xf32> -> vector<16x128xf32>
    %50 = arith.addf %45, %49 : vector<16x128xf32>
    %c2_31 = arith.constant 2 : index
    %c0_32 = arith.constant 0 : index
    %51 = vector.load %arg4[%c2_31, %c0_32] : memref<4x128xf32, #tpu.memory_space<vmem>>, vector<1x128xf32>
    %52 = vector.broadcast %51 : vector<1x128xf32> to vector<16x128xf32>
    %53 = arith.mulf %50, %52 : vector<16x128xf32>
    %c3 = arith.constant 3 : index
    %c0_33 = arith.constant 0 : index
    %54 = vector.load %arg4[%c3, %c0_33] : memref<4x128xf32, #tpu.memory_space<vmem>>, vector<1x128xf32>
    %55 = vector.broadcast %54 : vector<1x128xf32> to vector<16x128xf32>
    %56 = arith.addf %53, %55 : vector<16x128xf32>
    %c0_34 = arith.constant 0 : index
    %c0_35 = arith.constant 0 : index
    %c0_36 = arith.constant 0 : index
    %57 = vector.load %arg5[%c0_34, %c0_35, %c0_36] : memref<1x16x128xf32, #tpu.memory_space<vmem>>, vector<1x16x128xf32>
    %58 = vector.shape_cast %57 : vector<1x16x128xf32> to vector<16x128xf32>
    %59 = vector.shape_cast %56 : vector<16x128xf32> to vector<1x16x128xf32>
    tpu.vector_store %arg5[%c0_34, %c0_35, %c0_36], %59 {strides = array<i32>} : memref<1x16x128xf32, #tpu.memory_space<vmem>>, vector<1x16x128xf32>,
    return
  }
  func.func @transform_0(%arg0: i32) -> (i32, i32, i32) {
    %c0_i32 = arith.constant 0 : i32
    %c0_i32_0 = arith.constant 0 : i32
    %c0_i32_1 = arith.constant 0 : i32
    return %arg0, %c0_i32, %c0_i32_0 : i32, i32, i32
  }
  func.func @transform_1(%arg0: i32) -> (i32, i32, i32) {
    %c0_i32 = arith.constant 0 : i32
    %c0_i32_0 = arith.constant 0 : i32
    %c0_i32_1 = arith.constant 0 : i32
    %c0_i32_2 = arith.constant 0 : i32
    return %c0_i32, %c0_i32_0, %c0_i32_1 : i32, i32, i32
  }
  func.func @transform_2(%arg0: i32) -> (i32, i32, i32) {
    %c0_i32 = arith.constant 0 : i32
    %c0_i32_0 = arith.constant 0 : i32
    %c0_i32_1 = arith.constant 0 : i32
    %c0_i32_2 = arith.constant 0 : i32
    return %c0_i32, %c0_i32_0, %c0_i32_1 : i32, i32, i32
  }
  func.func @transform_3(%arg0: i32) -> (i32, i32) {
    %c0_i32 = arith.constant 0 : i32
    %c0_i32_0 = arith.constant 0 : i32
    %c0_i32_1 = arith.constant 0 : i32
    return %c0_i32, %c0_i32_0 : i32, i32
  }
  func.func @transform_4(%arg0: i32) -> (i32, i32, i32) {
    %c0_i32 = arith.constant 0 : i32
    %c0_i32_0 = arith.constant 0 : i32
    %c0_i32_1 = arith.constant 0 : i32
    return %arg0, %c0_i32, %c0_i32_0 : i32, i32, i32
  }
}

</mosaic_0001>

<bundles_post_ra>
// kernel: tpu_custom_call.1
= control target key start
LH: loop header
LB: loop body
LE: loop exit
PB: predicated region body
PF: predicated region fallthrough
CT: control target
= control target key end

     0   :  { %9 = vsyncpa [#allocation3], 0  ;;  %s1405_s0 = inlined_call_operand.vmem [shape: bf16[2,20,64], index: 0, kind: input, shape index: {}]   ;;  %s1406_s1 = inlined_call_operand.hbm [shape: bf16[3,64,128], index: 1, kind: input, shape index: {}]   ;;  %s1407_s2 = inlined_call_operand.hbm [shape: bf16[3,128,128], index: 2, kind: input, shape index: {}]   ;;  %s1408_s3 = inlined_call_operand.vmem [shape: f32[4,128], index: 3, kind: input, shape index: {}]   ;;  %s1409_s4 = inlined_call_operand.hbm [shape: f32[2,16,128], index: 4, kind: output, shape index: {}]  }
   0x1   :  { %10 = vsyncpa [#allocation6], 0 }
   0x2   :  { %11 = vsyncpa [#allocation4], 0 }
   0x3   :  { %13 = vsyncpa [#allocation4 + $0x1], 0  ;;  %s1279_s15 = smov 0   ;;  %s1281_s16 = smov 0  }
   0x4   :  { %s1283_s17 = smov 0   ;;  %s1285_s18 = smov 0  }
   0x5 LB: > { %s1300_s19 = sadd.s32 4294967295, %s1246_s18   ;;  %s840_s20 = sadd.s32 4294967294, %s1246_s18   ;;  %s1246_s18 = sphi %s1285_s18, %s1416_s18   ;;  %s1242_s17 = sphi %s1283_s17, %s1415_s17   ;;  %s1238_s16 = sphi %s1281_s16, %s1414_s16   ;;  %s1234_s15 = sphi %s1279_s15, %s1413_s15  }
   0x6   : > { %s1304_s21 = sadd.s32 1, %s1246_s18   ;;  %s115_s22 = sadd.s32 1, %s1242_s17 }
   0x7   : > { %s112_s23 = ssub.s32 %s1246_s18, %s1304_s21  ;;  %p125_p0 = scmp.ne.s32.totalorder %s1242_s17, %s1238_s16 }
   0x8   : > { %p113_p1 = scmp.eq.s32.totalorder %s112_s23, 0  ;;  %p126_p2 = scmp.eq.s32.totalorder %s1300_s19, 1 }
   0x9   : > { %p131_p3 = scmp.ne.s32.totalorder %s1238_s16, %s1234_s15  ;;  %p132_p4 = scmp.eq.s32.totalorder %s840_s20, 1 }
   0xa   : > { %s1315_s24 = scalar_select %p113_p1, %s1242_s17, %s115_s22  }
   0xb   : > { %p1317_p5 = por %p126_p2, %p125_p0  ;;  %p1321_p6 = por %p132_p4, %p131_p3 }
   0xc   : > { %p841_p7 = scmp.ge.s32.totalorder %s1246_s18, 1  ;;  %p139_p8 = scmp.lt.s32.totalorder %s1246_s18, 3 }
   0xd   : > { %p1069_p9 = scmp.eq.s32.totalorder %s1300_s19, 0  ;;  %s150_s30 = sshll.u32 %s1406_s1, 4  ;;  %s151_s30 = int_to_ptr.hbm [resolvable:$true] %s150_s30 }
   0xe   : > { %p1328_p10 = pnand %p841_p7, %p139_p8  ;;  %s1248_s5 = smov [#allocation2]  }
   0xf   : > { %s152_s6 = sshll.u32 %s1248_s5, 4  ;;  %s164_s9 = sshll.u32 %s1407_s2, 4  ;;  %s153_s6 = int_to_ptr.vmem [resolvable:$true] %s152_s6  ;;  %s165_s9 = int_to_ptr.hbm [resolvable:$true] %s164_s9 }
  0x10   : > { %p1058_p11 = pneg %p1328_p10  ;;  %s1249_s10 = smov 64  }
  0x11   : > { %s1250_s11 = smov 4   ;;  %s1251_s12 = smov [#allocation5]  }
  0x12   : > { %p1059_p12 = pnand %p1069_p9, %p1058_p11  ;;  %s166_s13 = sshll.u32 %s1251_s12, 4  ;;  %s167_s13 = int_to_ptr.vmem [resolvable:$true] %s166_s13 }
  0x13   : > { %193 = sbr.rel (%p1328_p10) target bundleno = 365 (0x16d), region = 36 }
  0x14   : > { %1061 = dma.hbm_to_vmem [thread:$0]  (!%p1059_p12), %s151_s30, 1536, %s153_s6, [#allocation3], %s1249_s10, %s1249_s10, %s1250_s11  }
  0x15   : > { %1064 = dma.hbm_to_vmem [thread:$0]  (!%p1059_p12), %s165_s9, 3072, %s167_s13, [#allocation6], %s1249_s10, %s1249_s10, %s1250_s11  }
  0x18   : > { %1221 = dma.done.wait (%p1069_p9), [#allocation3], 1536  }
  0x19   : > { %1223 = vsyncadd (%p1069_p9), [#allocation3], 4294965760 }
  0x1a   : > { %1225 = dma.done.wait (%p1069_p9), [#allocation6], 3072  }
  0x1b   : > { %1227 = vsyncadd (%p1069_p9), [#allocation6], 4294964224  ;;  %p225_p13 = scmp.lt.s32.totalorder %s1300_s19, 1  ;;  %v1017_v0 = vld [vmem:[#allocation2 + $0x38] sm:$0xff]  ;;  %v1016_v3 = vld [vmem:[#allocation2 + $0x30] sm:$0xff]  ;;  %vm379_vm1 = vcmask 1046528   ;;  %v447_v59 = vlaneseq }
  0x1c   : > { %v1013_v1 = vld [vmem:[#allocation2 + $0x18] sm:$0xff]  ;;  %310 = vmatpush.bf16.msra.mxu0 %v1017_v0  ;;  %v1012_v4 = vld [vmem:[#allocation2 + $0x10] sm:$0xff]  ;;  %v1015_v9 = vld [vmem:[#allocation2 + $0x28] sm:$0xff]  ;;  %vm259_vm0 = vsmask.f32 7424  ;;  %vm299_vm2 = vcmask 523264  }
  0x1d   : > { %s226_s14 = scalar_select %p225_p13, %s1300_s19, 1  ;;  %v1021_v2 = vld [vmem:[#allocation2 + $0x58] sm:$0xff]  ;;  %356 = vmatpush.bf16.msra.mxu1 %v1013_v1  ;;  %v1020_v5 = vld [vmem:[#allocation2 + $0x50] sm:$0xff]  ;;  %v1011_v10 = vld [vmem:[#allocation2 + $0x8] sm:$0xff]  ;;  %v448_v0 = vshrl.u32 %v447_v59, 7 }
  0x1e   : > { %417 = vmatpush.bf16.msra.mxu2 %v1021_v2  ;;  %v1019_v13 = vld [vmem:[#allocation2 + $0x48] sm:$0xff]  ;;  %v1014_v17 = vld [vmem:[#allocation2 + $0x20] sm:$0xff]  ;;  %v1029_v24 = vld [vmem:[#allocation5 + $0x38] sm:$0xff]  ;;  %s222_s6 = sand.u32 1, %s1238_s16   ;;  %s1046_s12 = sshll.u32 %s1300_s19, 4 }
  0x1f   : > { %s1047_s20 = smul.u32 12, %s226_s14  ;;  %v1010_v18 = vld [vmem:[#allocation2] sm:$0xff]  ;;  %v1028_v29 = vld [vmem:[#allocation5 + $0x30] sm:$0xff]  ;;  %v1027_v30 = vld [vmem:[#allocation5 + $0x28] sm:$0xff]  ;;  %vm451_vm3 = vcmp.eq.s32.totalorder %v448_v0, 0  ;;  %s848_s9 = sshll.u32 %s222_s6, 4 }
  0x20   : > { %311 = vmatpush.bf16.msra.mxu0 %v1016_v3  ;;  %v1018_v20 = vld [vmem:[#allocation2 + $0x40] sm:$0xff]  ;;  %v1045_v32 = vld [vmem:[#allocation5 + $0xb8] sm:$0xff]  ;;  %v1044_v35 = vld [vmem:[#allocation5 + $0xb0] sm:$0xff]  ;;  %s224_s22 = scalar_lea.vmem [#allocation7], %s848_s9  ;;  %s741_s19 = scalar_lea.sflag [#allocation4], %s222_s6 }
  0x21   : > { %s229_s27 = scalar_lea.vmem %s1405_s0, %s1047_s20  ;;  %357 = vmatpush.bf16.msra.mxu1 %v1012_v4  ;;  %v1026_v31 = vld [vmem:[#allocation5 + $0x20] sm:$0xff]  ;;  %v1037_v33 = vld [vmem:[#allocation5 + $0x78] sm:$0xff]  ;;  %v1036_v36 = vld [vmem:[#allocation5 + $0x70] sm:$0xff]  ;;  %s752_s20 = scalar_lea.hbm %s1409_s4, %s1046_s12 }
  0x22   : > { %v1009_v6 = vld [vmem:[%s229_s27] sm:$0xff]  ;;  %v233_v7 = vld [vmem:[%s229_s27 + $0x8] sm:$0x3]  ;;  %418 = vmatpush.bf16.msra.mxu2 %v1020_v5  ;;  %568 = vmatpush.bf16.msra.mxu3 %v1037_v33  ;;  %v1025_v34 = vld [vmem:[#allocation5 + $0x18] sm:$0xff]  ;;  %s753_s23 = sshll.u32 %s224_s22, 4  ;;  %s755_s27 = sshll.u32 %s752_s20, 4  ;;  %s754_s23 = int_to_ptr.vmem [resolvable:$true] %s753_s23  ;;  %s756_s27 = int_to_ptr.hbm [resolvable:$true] %s755_s27 }
  0x23   : > { %v256_v8 = vunpack.c.l.b16 %v233_v7  ;;  %v261_v11 = vshrl.u32 %v1009_v6, 16  ;;  %v263_v12 = vshll.u32 %v1009_v6, 16  ;;  %v380_v22 = vrot.slane %v1009_v6, 1  ;;  %v1024_v37 = vld [vmem:[#allocation5 + $0x10] sm:$0xff]  ;;  %v1043_v38 = vld [vmem:[#allocation5 + $0xa8] sm:$0xff]  ;;  %v1042_v41 = vld [vmem:[#allocation5 + $0xa0] sm:$0xff] }
  0x24   : > { %312 = vmatpush.bf16.msra.mxu0 %v1015_v9  ;;  %v1035_v39 = vld [vmem:[#allocation5 + $0x68] sm:$0xff]  ;;  %v1034_v42 = vld [vmem:[#allocation5 + $0x60] sm:$0xff]  ;;  %v1041_v44 = vld [vmem:[#allocation5 + $0x98] sm:$0xff]  ;;  %s1190_s28 = sshra.s32 %s756_s27, 4  ;;  %s1196_s7 = scalar_lea.hbm %s1409_s4, 32  ;;  %s1191_s28 = int_to_ptr.hbm [resolvable:$true] %s1190_s28 }
  0x25   : > { %v258_v14 = vpack.c.b16 %v256_v8, %v256_v8  ;;  %v265_v15 = vrot.slane %v263_v12, 1  ;;  %358 = vmatpush.bf16.msra.mxu1 %v1011_v10  ;;  %v1023_v40 = vld [vmem:[#allocation5 + $0x8] sm:$0xff]  ;;  %v1022_v43 = vld [vmem:[#allocation5] sm:$0xff]  ;;  %v1033_v45 = vld [vmem:[#allocation5 + $0x58] sm:$0xff]  ;;  %s1192_s29 = scalar_lea.hbm %s1191_s28, 16  ;;  %p1197_p3 = scmp.lt.s32.totalorder %s1191_s28, %s1409_s4 }
  0x26   : > { %419 = vmatpush.bf16.msra.mxu2 %v1019_v13  ;;  %569 = vmatpush.bf16.msra.mxu3 %v1036_v36  ;;  %v1040_v46 = vld [vmem:[#allocation5 + $0x90] sm:$0xff]  ;;  %v1039_v50 = vld [vmem:[#allocation5 + $0x88] sm:$0xff]  ;;  %v1038_v52 = vld [vmem:[#allocation5 + $0x80] sm:$0xff]  ;;  %p1193_p0 = scmp.ne.s32.totalorder %s1191_s28, %s1192_s29  ;;  %p1198_p4 = scmp.lt.s32.totalorder %s1196_s7, %s1192_s29 }
  0x27   : > { %v268_v16 = vshll.u32 %v258_v14, 16  ;;  %v266_v19 = vor.u32 %v265_v15, %v261_v11  ;;  %v381_v23 = vrot.slane %v258_v14, 1  ;;  %v272_v27 = vshrl.u32 %v258_v14, 16  ;;  %v1032_v47 = vld [vmem:[#allocation5 + $0x50] sm:$0xff]  ;;  %v1031_v51 = vld [vmem:[#allocation5 + $0x48] sm:$0xff]  ;;  %v1030_v54 = vld [vmem:[#allocation5 + $0x40] sm:$0xff] }
  0x28   : > { %313 = vmatpush.bf16.msra.mxu0 %v1014_v17  ;;  %v1112_v55 = vld [vmem:[%s1408_s3] ss:$0 sm:$0xff]  ;;  %v1113_v58 = vld [vmem:[%s1408_s3 + $0x1] ss:$0 sm:$0xff]  ;;  %p1194_p1 = pnand %p1193_p0, %p1317_p5  ;;  %p1199_p7 = por %p1198_p4, %p1197_p3 }
  0x29   : > { %v270_v21 = vrot.slane %v268_v16, 1  ;;  %359 = vmatpush.bf16.msra.mxu1 %v1010_v18  ;;  %v382_v26 = vsel %vm379_vm1, %v380_v22, %v381_v23  ;;  %v450_v18 = vadd.s32 16, %v448_v0 }
  0x2a   : > { %420 = vmatpush.bf16.msra.mxu2 %v1018_v20  ;;  %570 = vmatpush.bf16.msra.mxu3 %v1035_v39  ;;  %p1195_p2 = pneg %p1194_p1 }
  0x2b   : > { %v271_v25 = vsel %vm259_vm0, %v266_v19, %v270_v21  ;;  %v274_v28 = vor.u32 %v272_v27, %v270_v21  ;;  %vm456_vm4 = vcmp.eq.s32.totalorder %v450_v18, 17 }
  0x2c   : > { %631 = vmatpush.bf16.msrb.mxu0 %v1029_v24  ;;  %888 = vmatmul.msk.bf16.vlgmr.msra.gmra.mxu1 %vm299_vm2, %v1009_v6  ;;  %p1200_p8 = pnand %p1199_p7, %p1195_p2 }
  0x2d   : > { %870 = vmatmul.msk.bf16.vlgmr.msra.gmra.mxu0 %vm299_vm2, %v271_v25  ;;  %906 = vmatmul.msk.bf16.vlgmr.msra.gmra.mxu2 %vm299_vm2, %v382_v26 }
  0x2e   : > { %714 = vmatpush.bf16.msrb.mxu1 %v1045_v32  ;;  %571 = vmatpush.bf16.msra.mxu3 %v1034_v42 }
  0x30   : > { %632 = vmatpush.bf16.msrb.mxu0 %v1028_v29 }
  0x32   : > { %715 = vmatpush.bf16.msrb.mxu1 %v1044_v35  ;;  %572 = vmatpush.bf16.msra.mxu3 %v1033_v45 }
  0x34   : > { %633 = vmatpush.bf16.msrb.mxu0 %v1027_v30 }
  0x36   : > { %716 = vmatpush.bf16.msrb.mxu1 %v1043_v38  ;;  %573 = vmatpush.bf16.msra.mxu3 %v1032_v47 }
  0x38   : > { %634 = vmatpush.bf16.msrb.mxu0 %v1026_v31 }
  0x3a   : > { %717 = vmatpush.bf16.msrb.mxu1 %v1042_v41  ;;  %574 = vmatpush.bf16.msra.mxu3 %v1031_v51 }
  0x3c   : > { %889 = vmatmul.msk.bf16.gmra.mxu1 %vm299_vm2, %v258_v14  ;;  %635 = vmatpush.bf16.msrb.mxu0 %v1025_v34 }
  0x3d   : > { %871 = vmatmul.msk.bf16.gmra.mxu0 %vm299_vm2, %v274_v28  ;;  %907 = vmatmul.msk.bf16.gmra.mxu2 %vm299_vm2, %v381_v23 }
  0x3e   : > { %718 = vmatpush.bf16.msrb.mxu1 %v1041_v44  ;;  %575 = vmatpush.bf16.msra.mxu3 %v1030_v54  ;;  %v1114_v44 = vld [vmem:[%s1408_s3 + $0x2] ss:$0 sm:$0xff] }
  0x40   : > { %636 = vmatpush.bf16.msrb.mxu0 %v1024_v37 }
  0x42   : > { %719 = vmatpush.bf16.msrb.mxu1 %v1040_v46  ;;  %v1115_v46 = vld [vmem:[%s1408_s3 + $0x3] ss:$0 sm:$0xff] }
  0x44   : > { %637 = vmatpush.bf16.msrb.mxu0 %v1023_v40 }
  0x46   : > { %720 = vmatpush.bf16.msrb.mxu1 %v1039_v50 }
  0x48   : > { %638 = vmatpush.bf16.msrb.mxu0 %v1022_v43 }
  0x4a   : > { %721 = vmatpush.bf16.msrb.mxu1 %v1038_v52 }
  0xa9   : > { %v361_v49 = vpop.f32.mrf.mxu1 }
  0xaa   : > { %v315_v48 = vpop.f32.mrf.mxu0 }
  0xab   : > { %v362_v53 = vadd.f32 %v361_v49, %v315_v48 }
  0xb0   : > { %v422_v56 = vpop.f32.mrf.mxu2 }
  0xb1   : > { %v431_v57 = vadd.f32 %v422_v56, %v362_v53  ;;  %v363_v61 = vpop.f32.mrf.mxu1 }
  0xb2   : > { %v317_v60 = vpop.f32.mrf.mxu0 }
  0xb3   : > { %v436_v62 = vmul.f32 %v1112_v55, %v431_v57  ;;  %v364_v1 = vadd.f32 %v363_v61, %v317_v60 }
  0xb5   : > { %v441_v63 = vadd.f32 %v1113_v58, %v436_v62 }
  0xb7   : > { %v444_v2 = vmax.f32 %v441_v63, 0.0 }
  0xb8   : > { %v424_v3 = vpop.f32.mrf.mxu2 }
  0xb9   : > { %v432_v4 = vadd.f32 %v424_v3, %v364_v1  ;;  %v366_v6 = vpop.f32.mrf.mxu1  ;;  %v460_v8 = vsel %vm451_vm3, 0.0, %v444_v2 }
  0xba   : > { %v320_v5 = vpop.f32.mrf.mxu0  ;;  %v463_v11 = vpack.c.bf16 %v460_v8, %v460_v8 }
  0xbb   : > { %v437_v7 = vmul.f32 %v1112_v55, %v432_v4  ;;  %v367_v10 = vadd.f32 %v366_v6, %v320_v5 }
  0xbc   : > { %v502_v19 = vunpack.c.l.b16 %v463_v11 }
  0xbd   : > { %v442_v9 = vadd.f32 %v1113_v58, %v437_v7 }
  0xbf   : > { %v445_v12 = vmax.f32 %v442_v9, 0.0 }
  0xc0   : > { %v427_v13 = vpop.f32.mrf.mxu2 }
  0xc1   : > { %v464_v14 = vpack.c.bf16 %v445_v12, %v445_v12  ;;  %v433_v15 = vadd.f32 %v427_v13, %v367_v10  ;;  %v368_v17 = vpop.f32.mrf.mxu1 }
  0xc2   : > { %v322_v16 = vpop.f32.mrf.mxu0 }
  0xc3   : > { %v503_v20 = vunpack.c.l.b16 %v464_v14  ;;  %v438_v21 = vmul.f32 %v1112_v55, %v433_v15 }
  0xc5   : > { %v443_v22 = vadd.f32 %v1113_v58, %v438_v21  ;;  %v505_v23 = vpack.c.b16 %v503_v20, %v502_v19 }
  0xc7   : > { %v446_v24 = vmax.f32 %v443_v22, 0.0  ;;  %639 = vmatmul.bf16.vlgmr.msrb.gmra.mxu0 %v505_v23  ;;  %v510_v28 = vshll.u32 %v505_v23, 16  ;;  %v662_v32 = vrot.slane %v505_v23, 1  ;;  %v508_v34 = vshrl.u32 %v505_v23, 16 }
  0xc8   : > { %v429_v25 = vpop.f32.mrf.mxu2 }
  0xc9   : > { %v462_v26 = vsel %vm456_vm4, 0.0, %v446_v24  ;;  %v512_v31 = vrot.slane %v510_v28, 1 }
  0xca   : > { %v465_v27 = vpack.c.bf16 %v462_v26, %v462_v26 }
  0xcb   : > { %v513_v37 = vor.u32 %v512_v31, %v508_v34 }
  0xcc   : > { %v504_v29 = vunpack.c.l.b16 %v465_v27 }
  0xce   : > { %v506_v30 = vpack.c.b16 %v504_v29, %v504_v29 }
  0xd0   : > { %v663_v33 = vrot.slane %v506_v30, 1  ;;  %v515_v35 = vshll.u32 %v506_v30, 16 }
  0xd2   : > { %v664_v36 = vsel %vm379_vm1, %v662_v32, %v663_v33  ;;  %v517_v38 = vrot.slane %v515_v35, 1 }
  0xd3   : > { %722 = vmatmul.bf16.vlgmr.msrb.gmra.mxu1 %v664_v36 }
  0xd4   : > { %v518_v39 = vsel %vm259_vm0, %v513_v37, %v517_v38 }
  0xd5   : > { %576 = vmatmul.bf16.vlgmr.msra.gmra.mxu3 %v518_v39 }
 0x144   : > { %v640_v40 = vpop.f32.mrf.mxu0 }
 0x14c   : > { %v642_v49 = vpop.f32.mrf.mxu0 }
 0x150   : > { %v723_v41 = vpop.f32.mrf.mxu1 }
 0x158   : > { %v577_v42 = vpop.f32.mrf.mxu3  ;;  %v725_v52 = vpop.f32.mrf.mxu1 }
 0x159   : > { %v641_v43 = vadd.f32 %v640_v40, %v577_v42 }
 0x15b   : > { %v728_v45 = vadd.f32 %v723_v41, %v641_v43 }
 0x15d   : > { %v732_v47 = vmul.f32 %v1114_v44, %v728_v45 }
 0x15f   : > { %v736_v48 = vadd.f32 %v1115_v46, %v732_v47 }
 0x160   : > { %v579_v50 = vpop.f32.mrf.mxu3 }
 0x161   : > { %738 = vst [vmem:[%s224_s22] sm:$0xff] %v736_v48  ;;  %v643_v51 = vadd.f32 %v642_v49, %v579_v50 }
 0x163   : > { %v729_v53 = vadd.f32 %v725_v52, %v643_v51 }
 0x165   : > { %v733_v54 = vmul.f32 %v1114_v44, %v729_v53 }
 0x167   : > { %v737_v55 = vadd.f32 %v1115_v46, %v733_v54 }
 0x169   : > { %739 = vst [vmem:[%s224_s22 + $0x8] sm:$0xff] %v737_v55 }
 0x16a   : > { %1203 = shalt.err (!%p1200_p8)
}
 0x16b   : > { %s1252_s6 = smov 128   ;;  %s1253_s10 = smov 8  }
 0x16c   : > { %1056 = dma.vmem_to_hbm [thread:$0]  (%p1317_p5), %s754_s23, 256, %s756_s27, %s741_s19, %s1252_s6, %s1252_s6, %s1253_s10  }
 0x16d PF: > { %p1073_p9 = scmp.ge.s32.totalorder %s1246_s18, 2  ;;  %s770_s11 = sand.u32 1, %s1234_s15  }
 0x16e   : > { %s771_s12 = scalar_lea.sflag [#allocation4], %s770_s11 }
 0x16f   : > { %p1066_p10 = pnand %p1073_p9, %p1321_p6 }
 0x171   : > { %p1067_p11 = pneg %p1066_p10 }
 0x173   : > { %1229 = dma.done.wait (%p1067_p11), %s771_s12, 256  }
 0x174   : > { %1231 = vsyncadd (%p1067_p11), %s771_s12, 4294967040  ;;  %p16_p12 = scmp.ge.s32.totalorder %s1304_s21, 4   ;;  %s1413_s15 = smov %s1238_s16 }
 0x175   : > { %s1414_s16 = smov %s1242_s17  ;;  %s1415_s17 = smov %s1315_s24 }
 0x176   : > { %s1416_s18 = smov %s1304_s21  ;;  %18 = sbr.rel (!%p16_p12) target bundleno = 5 (0x5), region = 84 }
 0x17b   :  { %777 = vsyncpa [#allocation3], 1 }
 0x17c   :  { %779 = vsyncpa [#allocation3 + $0x1], 1 }
 0x17d   :  { %780 = vsyncpa [#allocation6], 1 }
 0x17e   :  { %781 = vsyncpa [#allocation4], 1 }
 0x17f   :  { %783 = vsyncpa [#allocation4 + $0x1], 1 }

</bundles_post_ra>
